<compile_context>
chip_gen: v7x
topology: tpu7x:2x2x1
jax: 0.10.0
libtpu: 0.0.40
codegen_flags: <defaults>
</compile_context>

<pallas_src>
import functools

import jax
import jax.numpy as jnp
from jax import lax
from jax.experimental import pallas as pl
from jax.experimental.pallas import tpu as pltpu


# ----------------------------------------------------------------------------
# Fused Pallas kernel (one batch element per grid step).
# ----------------------------------------------------------------------------
def _ternaus_up_kernel(e1_ref, x2_ref, wu_ref, su_ref, bu_ref,
                       wc_ref, sc_ref, bc_ref, o_ref, *, Wo):
    # e1_ref: (Cin,  L)   zero-dilated x1 on the output grid (bf16), L = Ho*Wo
    # x2_ref: (Cskip,L)   skip connection (f32, cast in-kernel)
    # wu_ref: (Cup,  9*Cin)    up-conv weights, GEMM form (flipped kernel)
    # su/bu:  (Cup, 1)    folded scale / bias for the up stage (f32)
    # wc_ref: (Cout, 9*(Cup+Cskip)) 3x3-conv weights, GEMM form
    # sc/bc:  (Cout, 1)   folded scale / bias for the conv stage (f32)
    # o_ref:  (Cout, L)   lane-dense output block (f32)
    cd = wu_ref.dtype                       # MXU input dtype (bf16)
    L = o_ref.shape[-1]
    col = lax.broadcasted_iota(jnp.int32, (1, L), 1) % Wo   # x coordinate per lane

    def shifted_tap(img, dy, dx):
        # img: (C, L).  Lane l (pixel (y, x)) of the result holds img[(y+dy, x+dx)],
        # zero when the source pixel is outside the image.
        C = img.shape[0]
        s = dy * Wo + dx
        if s == 0:
            sh = img
        elif s > 0:
            sh = jnp.concatenate([img[:, s:], jnp.zeros((C, s), img.dtype)], axis=1)
        else:
            sh = jnp.concatenate([jnp.zeros((C, -s), img.dtype), img[:, :s]], axis=1)
        # Rows out of range land outside [0, L) and are already zero-filled;
        # only the column wrap-around across row boundaries needs a mask.
        if dx == -1:
            sh = jnp.where(col >= 1, sh, jnp.zeros_like(sh))
        elif dx == 1:
            sh = jnp.where(col < Wo - 1, sh, jnp.zeros_like(sh))
        return sh

    def im2col(img):
        # (C, L) -> (9*C, L): widened-K patch slab so each conv is a single GEMM.
        return jnp.concatenate(
            [shifted_tap(img, dy, dx) for dy in (-1, 0, 1) for dx in (-1, 0, 1)],
            axis=0)

    def conv3x3_gemm(img, w, scale, bias):
        # One MXU push: (Cout, 9*Cin) @ (9*Cin, L) with f32 accumulation,
        # fused scale/bias + ReLU epilogue in f32.
        acc = lax.dot_general(w, im2col(img), (((1,), (0,)), ((), ())),
                              preferred_element_type=jnp.float32)
        return jnp.maximum(acc * scale + bias, 0.0)             # (Cout, L) f32

    # Stage 1: transposed conv (== 3x3 conv over the zero-dilated grid) + ReLU.
    up = conv3x3_gemm(e1_ref[...].astype(cd), wu_ref[...], su_ref[...], bu_ref[...])

    # Stage 2: torch.cat([x1_up, x2], dim=1) stays in registers/VMEM (never HBM),
    # then 3x3 conv + ReLU, stored lane-dense as (Cout, Ho*Wo).
    cat = jnp.concatenate([up.astype(cd), x2_ref[...].astype(cd)], axis=0)
    out = conv3x3_gemm(cat, wc_ref[...], sc_ref[...], bc_ref[...])
    o_ref[...] = out.astype(o_ref.dtype)


# ----------------------------------------------------------------------------
# Public wrapper: NCHW in / NCHW out, matching the PyTorch module.
# ----------------------------------------------------------------------------
@functools.partial(jax.jit, static_argnames=("compute_dtype",))
def ternaus_up_forward(x1, x2, params, compute_dtype=jnp.bfloat16):
    """x1: (N, Cin, H, W) low-res input; x2: (N, Cskip, 2H, 2W) skip connection.
    Returns (N, Cout, 2H, 2W) float32."""
    N, Cin, H, W = x1.shape
    N2, Cskip, Ho, Wo = x2.shape
    assert N2 == N and Ho == 2 * H and Wo == 2 * W
    Cup = params["w_up"].shape[1]
    Cout = params["w_cv"].shape[0]
    Ccat = Cup + Cskip
    L = Ho * Wo
    cd = compute_dtype

    # ConvTranspose2d(k=3, s=2, p=1, op=1) == 3x3 SAME conv (flipped kernel) over
    # the zero-dilated grid E with E[:, :, 2i, 2j] = x1[:, :, i, j].
    # TODO(synk): move this dilation in-kernel to skip one (small) HBM copy.
    e1 = lax.pad(x1.astype(cd), jnp.zeros((), cd),
                 ((0, 0, 0), (0, 0, 0), (0, 1, 1), (0, 1, 1)))   # (N, Cin, Ho, Wo)
    e1 = e1.reshape(N, Cin, L)
    x2f = x2.reshape(N, Cskip, L)      # no wrapper cast: bf16 cast happens in-kernel

    # GEMM-form weights: one contiguous 2D slab per conv, K = 9*C on the
    # contraction axis, fetched once (constant index_map).
    w_up_g = jnp.transpose(jnp.flip(params["w_up"].astype(cd), (2, 3)),
                           (1, 2, 3, 0)).reshape(Cup, 9 * Cin)
    w_cv_g = jnp.transpose(params["w_cv"].astype(cd),
                           (0, 2, 3, 1)).reshape(Cout, 9 * Ccat)
    su = params["scale_up"].reshape(Cup, 1).astype(jnp.float32)
    bu = params["bias_up"].reshape(Cup, 1).astype(jnp.float32)
    sc = params["scale_cv"].reshape(Cout, 1).astype(jnp.float32)
    bc = params["bias_cv"].reshape(Cout, 1).astype(jnp.float32)

    grid_spec = pltpu.PrefetchScalarGridSpec(
        num_scalar_prefetch=0,
        grid=(N,),
        in_specs=[
            pl.BlockSpec((None, Cin, L), lambda n: (n, 0, 0)),
            pl.BlockSpec((None, Cskip, L), lambda n: (n, 0, 0)),
            pl.BlockSpec((Cup, 9 * Cin), lambda n: (0, 0)),
            pl.BlockSpec((Cup, 1), lambda n: (0, 0)),
            pl.BlockSpec((Cup, 1), lambda n: (0, 0)),
            pl.BlockSpec((Cout, 9 * Ccat), lambda n: (0, 0)),
            pl.BlockSpec((Cout, 1), lambda n: (0, 0)),
            pl.BlockSpec((Cout, 1), lambda n: (0, 0)),
        ],
        out_specs=pl.BlockSpec((None, Cout, L), lambda n: (n, 0, 0)),
    )
    out = pl.pallas_call(
        functools.partial(_ternaus_up_kernel, Wo=Wo),
        out_shape=jax.ShapeDtypeStruct((N, Cout, L), jnp.float32),
        grid_spec=grid_spec,
        compiler_params=pltpu.CompilerParams(dimension_semantics=("parallel",)),
    )(e1, x2f, w_up_g, su, bu, w_cv_g, sc, bc)

    return out.reshape(N, Cout, Ho, Wo)    # free reshape to NCHW


# ----------------------------------------------------------------------------
# Deterministic parameter construction (torch layouts; BN folded if bn=True).
# ----------------------------------------------------------------------------
def make_ternaus_up_params(key, in_channels, in_up_channels, skip_conn_channels,
                           out_channels, bn=False, eps=1e-5):
    ks = jax.random.split(key, 12)
    cat_ch = in_up_channels + skip_conn_channels
    # ConvTranspose2d weight: (in, out, kH, kW); Conv2d weight: (out, in, kH, kW).
    w_up = 0.1 * jax.random.normal(ks[0], (in_channels, in_up_channels, 3, 3), jnp.float32)
    b_up = 0.1 * jax.random.normal(ks[1], (in_up_channels,), jnp.float32)
    w_cv = 0.1 * jax.random.normal(ks[2], (out_channels, cat_ch, 3, 3), jnp.float32)
    b_cv = 0.1 * jax.random.normal(ks[3], (out_channels,), jnp.float32)

    def bn_fold(kg, kb, km, kv, ch, conv_bias):
        gamma = 1.0 + 0.1 * jax.random.normal(kg, (ch,), jnp.float32)
        beta = 0.1 * jax.random.normal(kb, (ch,), jnp.float32)
        mean = 0.05 * jax.random.normal(km, (ch,), jnp.float32)
        var = 1.0 + 0.1 * jnp.abs(jax.random.normal(kv, (ch,), jnp.float32))
        scale = gamma / jnp.sqrt(var + eps)
        bias = beta + (conv_bias - mean) * scale
        return scale, bias

    if bn:
        scale_up, bias_up = bn_fold(ks[4], ks[5], ks[6], ks[7], in_up_channels, b_up)
        scale_cv, bias_cv = bn_fold(ks[8], ks[9], ks[10], ks[11], out_channels, b_cv)
    else:
        scale_up, bias_up = jnp.ones((in_up_channels,), jnp.float32), b_up
        scale_cv, bias_cv = jnp.ones((out_channels,), jnp.float32), b_cv

    return dict(w_up=w_up, w_cv=w_cv, scale_up=scale_up, bias_up=bias_up,
                scale_cv=scale_cv, bias_cv=bias_cv)


# ----------------------------------------------------------------------------
# Independent pure-JAX/XLA reference (torch weight layouts, standard convs).
# ----------------------------------------------------------------------------
@functools.partial(jax.jit, static_argnames=("compute_dtype",))
def ternaus_up_reference(x1, x2, params, compute_dtype=jnp.bfloat16):
    cd = compute_dtype
    w_up = params["w_up"].astype(cd)                       # (Cin, Cup, 3, 3)
    w_cv = params["w_cv"].astype(cd)                       # (Cout, Ccat, 3, 3)

    # ConvTranspose2d(k=3, s=2, p=1, op=1) == lhs-dilated conv with flipped kernel.
    w_dir = jnp.transpose(jnp.flip(w_up, (2, 3)), (1, 0, 2, 3))   # (Cup, Cin, 3, 3)
    up = lax.conv_general_dilated(
        x1.astype(cd), w_dir, window_strides=(1, 1), padding=((1, 2), (1, 2)),
        lhs_dilation=(2, 2), dimension_numbers=("NCHW", "OIHW", "NCHW"),
        preferred_element_type=jnp.float32)
    up = jnp.maximum(up * params["scale_up"][None, :, None, None]
                     + params["bias_up"][None, :, None, None], 0.0)

    cat = jnp.concatenate([up.astype(cd), x2.astype(cd)], axis=1)
    y = lax.conv_general_dilated(
        cat, w_cv, window_strides=(1, 1), padding=((1, 1), (1, 1)),
        dimension_numbers=("NCHW", "OIHW", "NCHW"),
        preferred_element_type=jnp.float32)
    y = jnp.maximum(y * params["scale_cv"][None, :, None, None]
                    + params["bias_cv"][None, :, None, None], 0.0)
    return y


if __name__ == "__main__":
    key = jax.random.PRNGKey(0)
    k1, k2, kp = jax.random.split(key, 3)

    # TernausUp(in_channels=8, in_up_channels=4, skip_conn_channels=4, out_channels=8)
    #   x1: (N, in_channels, H, W), x2: (N, skip_conn_channels, 2H, 2W)
    N, in_ch, up_ch, skip_ch, out_ch = 2, 8, 4, 4, 8
    H = W = 8
    x1 = jax.random.normal(k1, (N, in_ch, H, W), jnp.float32)
    x2 = jax.random.normal(k2, (N, skip_ch, 2 * H, 2 * W), jnp.float32)
    params = make_ternaus_up_params(kp, in_ch, up_ch, skip_ch, out_ch, bn=False)

    out = jax.block_until_ready(ternaus_up_forward(x1, x2, params))
    assert out.shape == (N, out_ch, 2 * H, 2 * W), out.shape

    ref = jax.block_until_ready(ternaus_up_reference(x1, x2, params))
    # bf16 MXU inputs with f32 accumulation on both paths; the intermediate `up`
    # is re-rounded to bf16 independently in each path, so allow a few bf16 ulps.
    if not jnp.allclose(out, ref, atol=5e-3, rtol=5e-3):
        raise AssertionError("Pallas TernausUp kernel mismatch vs JAX reference")

    print("KERNEL_OK")
</pallas_src>

<mosaic_0001>
module attributes {stable_mosaic.version = 11 : i64} {
  func.func @_ternaus_up_kernel(%arg0: i32, %arg1: memref<1x8x256xbf16, #tpu.memory_space<vmem>>, %arg2: memref<1x4x256xf32, #tpu.memory_space<vmem>>, %arg3: memref<4x72xbf16, #tpu.memory_space<vmem>>, %arg4: memref<4x1xf32, #tpu.memory_space<vmem>>, %arg5: memref<4x1xf32, #tpu.memory_space<vmem>>, %arg6: memref<8x72xbf16, #tpu.memory_space<vmem>>, %arg7: memref<8x1xf32, #tpu.memory_space<vmem>>, %arg8: memref<8x1xf32, #tpu.memory_space<vmem>>, %arg9: memref<1x8x256xf32, #tpu.memory_space<vmem>>) attributes {dimension_semantics = [#tpu.dimension_semantics<parallel>], iteration_bounds = array<i64: 2>, scalar_prefetch = 0 : i64, scratch_operands = 0 : i64, tpu.core_type = #tpu.core_type<tc>, window_params = [{transform_indices = @transform_0, window_bounds = array<i64: 1, 8, 256>}, {transform_indices = @transform_1, window_bounds = array<i64: 1, 4, 256>}, {pipeline_mode = #tpu.pipeline_mode<synchronous>, transform_indices = @transform_2, window_bounds = array<i64: 4, 72>}, {pipeline_mode = #tpu.pipeline_mode<synchronous>, transform_indices = @transform_3, window_bounds = array<i64: 4, 1>}, {pipeline_mode = #tpu.pipeline_mode<synchronous>, transform_indices = @transform_4, window_bounds = array<i64: 4, 1>}, {pipeline_mode = #tpu.pipeline_mode<synchronous>, transform_indices = @transform_5, window_bounds = array<i64: 8, 72>}, {pipeline_mode = #tpu.pipeline_mode<synchronous>, transform_indices = @transform_6, window_bounds = array<i64: 8, 1>}, {pipeline_mode = #tpu.pipeline_mode<synchronous>, transform_indices = @transform_7, window_bounds = array<i64: 8, 1>}, {transform_indices = @transform_8, window_bounds = array<i64: 1, 8, 256>}]} {
    %0 = tpu.iota {dimensions = array<i32: 1>} : vector<1x256xi32>
    %c16_i32 = arith.constant 16 : i32
    %c0_i32 = arith.constant 0 : i32
    %1 = arith.cmpi eq, %c16_i32, %c0_i32 : i32
    %c1_i32 = arith.constant 1 : i32
    %2 = arith.select %1, %c1_i32, %c16_i32 : i32
    %3 = vector.broadcast %2 : i32 to vector<1x256xi32>
    %4 = arith.remsi %0, %3 : vector<1x256xi32>
    %c0_i32_0 = arith.constant 0 : i32
    %5 = vector.broadcast %c0_i32_0 : i32 to vector<1x256xi32>
    %6 = arith.cmpi ne, %4, %5 : vector<1x256xi32>
    %c0_i32_1 = arith.constant 0 : i32
    %7 = vector.broadcast %c0_i32_1 : i32 to vector<1x256xi32>
    %8 = arith.cmpi slt, %4, %7 : vector<1x256xi32>
    %c0_i32_2 = arith.constant 0 : i32
    %9 = arith.cmpi slt, %2, %c0_i32_2 : i32
    %10 = vector.broadcast %9 : i1 to vector<1x256xi1>
    %11 = vector.broadcast %10 : vector<1x256xi1> to vector<1x256xi1>
    %12 = arith.xori %8, %11 : vector<1x256xi1>
    %13 = arith.andi %12, %6 : vector<1x256xi1>
    %14 = vector.broadcast %2 : i32 to vector<1x256xi32>
    %15 = arith.addi %4, %14 : vector<1x256xi32>
    %16 = arith.select %13, %15, %4 : vector<1x256xi1>, vector<1x256xi32>
    %c0 = arith.constant 0 : index
    %c0_3 = arith.constant 0 : index
    %c0_4 = arith.constant 0 : index
    %17 = vector.load %arg1[%c0, %c0_3, %c0_4] : memref<1x8x256xbf16, #tpu.memory_space<vmem>>, vector<1x8x256xbf16>
    %18 = vector.shape_cast %17 : vector<1x8x256xbf16> to vector<8x256xbf16>
    %c0_5 = arith.constant 0 : index
    %c0_6 = arith.constant 0 : index
    %19 = vector.load %arg3[%c0_5, %c0_6] : memref<4x72xbf16, #tpu.memory_space<vmem>>, vector<4x72xbf16>
    %c0_7 = arith.constant 0 : index
    %c0_8 = arith.constant 0 : index
    %20 = vector.load %arg4[%c0_7, %c0_8] : memref<4x1xf32, #tpu.memory_space<vmem>>, vector<4x1xf32>
    %c0_9 = arith.constant 0 : index
    %c0_10 = arith.constant 0 : index
    %21 = vector.load %arg5[%c0_9, %c0_10] : memref<4x1xf32, #tpu.memory_space<vmem>>, vector<4x1xf32>
    %cst = arith.constant 0.000000e+00 : bf16
    %22 = vector.broadcast %cst : bf16 to vector<8x17xbf16>
    %23 = vector.extract_strided_slice %18 {offsets = [0, 0], sizes = [8, 239], strides = [1, 1]} : vector<8x256xbf16> to vector<8x239xbf16>
    %24 = tpu.concatenate %22, %23 in 1 : vector<8x17xbf16>, vector<8x239xbf16> -> vector<8x256xbf16>
    %c1_i32_11 = arith.constant 1 : i32
    %25 = vector.broadcast %c1_i32_11 : i32 to vector<1x256xi32>
    %26 = arith.cmpi sge, %16, %25 : vector<1x256xi32>
    %cst_12 = arith.constant 0.000000e+00 : bf16
    %27 = vector.broadcast %cst_12 : bf16 to vector<8x256xbf16>
    %28 = vector.shape_cast %26 : vector<1x256xi1> to vector<1x256xi1>
    %29 = vector.broadcast %28 : vector<1x256xi1> to vector<8x256xi1>
    %30 = arith.select %29, %24, %27 : vector<8x256xi1>, vector<8x256xbf16>
    %cst_13 = arith.constant 0.000000e+00 : bf16
    %31 = vector.broadcast %cst_13 : bf16 to vector<8x16xbf16>
    %32 = vector.extract_strided_slice %18 {offsets = [0, 0], sizes = [8, 240], strides = [1, 1]} : vector<8x256xbf16> to vector<8x240xbf16>
    %33 = tpu.concatenate %31, %32 in 1 : vector<8x16xbf16>, vector<8x240xbf16> -> vector<8x256xbf16>
    %cst_14 = arith.constant 0.000000e+00 : bf16
    %34 = vector.broadcast %cst_14 : bf16 to vector<8x15xbf16>
    %35 = vector.extract_strided_slice %18 {offsets = [0, 0], sizes = [8, 241], strides = [1, 1]} : vector<8x256xbf16> to vector<8x241xbf16>
    %36 = tpu.concatenate %34, %35 in 1 : vector<8x15xbf16>, vector<8x241xbf16> -> vector<8x256xbf16>
    %c15_i32 = arith.constant 15 : i32
    %37 = vector.broadcast %c15_i32 : i32 to vector<1x256xi32>
    %38 = arith.cmpi slt, %16, %37 : vector<1x256xi32>
    %cst_15 = arith.constant 0.000000e+00 : bf16
    %39 = vector.broadcast %cst_15 : bf16 to vector<8x256xbf16>
    %40 = vector.shape_cast %38 : vector<1x256xi1> to vector<1x256xi1>
    %41 = vector.broadcast %40 : vector<1x256xi1> to vector<8x256xi1>
    %42 = arith.select %41, %36, %39 : vector<8x256xi1>, vector<8x256xbf16>
    %cst_16 = arith.constant 0.000000e+00 : bf16
    %43 = vector.broadcast %cst_16 : bf16 to vector<8x1xbf16>
    %44 = vector.extract_strided_slice %18 {offsets = [0, 0], sizes = [8, 255], strides = [1, 1]} : vector<8x256xbf16> to vector<8x255xbf16>
    %45 = tpu.concatenate %43, %44 in 1 : vector<8x1xbf16>, vector<8x255xbf16> -> vector<8x256xbf16>
    %c1_i32_17 = arith.constant 1 : i32
    %46 = vector.broadcast %c1_i32_17 : i32 to vector<1x256xi32>
    %47 = arith.cmpi sge, %16, %46 : vector<1x256xi32>
    %cst_18 = arith.constant 0.000000e+00 : bf16
    %48 = vector.broadcast %cst_18 : bf16 to vector<8x256xbf16>
    %49 = vector.shape_cast %47 : vector<1x256xi1> to vector<1x256xi1>
    %50 = vector.broadcast %49 : vector<1x256xi1> to vector<8x256xi1>
    %51 = arith.select %50, %45, %48 : vector<8x256xi1>, vector<8x256xbf16>
    %52 = vector.extract_strided_slice %18 {offsets = [0, 1], sizes = [8, 255], strides = [1, 1]} : vector<8x256xbf16> to vector<8x255xbf16>
    %cst_19 = arith.constant 0.000000e+00 : bf16
    %53 = vector.broadcast %cst_19 : bf16 to vector<8x1xbf16>
    %54 = tpu.concatenate %52, %53 in 1 : vector<8x255xbf16>, vector<8x1xbf16> -> vector<8x256xbf16>
    %c15_i32_20 = arith.constant 15 : i32
    %55 = vector.broadcast %c15_i32_20 : i32 to vector<1x256xi32>
    %56 = arith.cmpi slt, %16, %55 : vector<1x256xi32>
    %cst_21 = arith.constant 0.000000e+00 : bf16
    %57 = vector.broadcast %cst_21 : bf16 to vector<8x256xbf16>
    %58 = vector.shape_cast %56 : vector<1x256xi1> to vector<1x256xi1>
    %59 = vector.broadcast %58 : vector<1x256xi1> to vector<8x256xi1>
    %60 = arith.select %59, %54, %57 : vector<8x256xi1>, vector<8x256xbf16>
    %61 = vector.extract_strided_slice %18 {offsets = [0, 15], sizes = [8, 241], strides = [1, 1]} : vector<8x256xbf16> to vector<8x241xbf16>
    %cst_22 = arith.constant 0.000000e+00 : bf16
    %62 = vector.broadcast %cst_22 : bf16 to vector<8x15xbf16>
    %63 = tpu.concatenate %61, %62 in 1 : vector<8x241xbf16>, vector<8x15xbf16> -> vector<8x256xbf16>
    %c1_i32_23 = arith.constant 1 : i32
    %64 = vector.broadcast %c1_i32_23 : i32 to vector<1x256xi32>
    %65 = arith.cmpi sge, %16, %64 : vector<1x256xi32>
    %cst_24 = arith.constant 0.000000e+00 : bf16
    %66 = vector.broadcast %cst_24 : bf16 to vector<8x256xbf16>
    %67 = vector.shape_cast %65 : vector<1x256xi1> to vector<1x256xi1>
    %68 = vector.broadcast %67 : vector<1x256xi1> to vector<8x256xi1>
    %69 = arith.select %68, %63, %66 : vector<8x256xi1>, vector<8x256xbf16>
    %70 = vector.extract_strided_slice %18 {offsets = [0, 16], sizes = [8, 240], strides = [1, 1]} : vector<8x256xbf16> to vector<8x240xbf16>
    %cst_25 = arith.constant 0.000000e+00 : bf16
    %71 = vector.broadcast %cst_25 : bf16 to vector<8x16xbf16>
    %72 = tpu.concatenate %70, %71 in 1 : vector<8x240xbf16>, vector<8x16xbf16> -> vector<8x256xbf16>
    %73 = vector.extract_strided_slice %18 {offsets = [0, 17], sizes = [8, 239], strides = [1, 1]} : vector<8x256xbf16> to vector<8x239xbf16>
    %cst_26 = arith.constant 0.000000e+00 : bf16
    %74 = vector.broadcast %cst_26 : bf16 to vector<8x17xbf16>
    %75 = tpu.concatenate %73, %74 in 1 : vector<8x239xbf16>, vector<8x17xbf16> -> vector<8x256xbf16>
    %c15_i32_27 = arith.constant 15 : i32
    %76 = vector.broadcast %c15_i32_27 : i32 to vector<1x256xi32>
    %77 = arith.cmpi slt, %16, %76 : vector<1x256xi32>
    %cst_28 = arith.constant 0.000000e+00 : bf16
    %78 = vector.broadcast %cst_28 : bf16 to vector<8x256xbf16>
    %79 = vector.shape_cast %77 : vector<1x256xi1> to vector<1x256xi1>
    %80 = vector.broadcast %79 : vector<1x256xi1> to vector<8x256xi1>
    %81 = arith.select %80, %75, %78 : vector<8x256xi1>, vector<8x256xbf16>
    %82 = tpu.concatenate %30, %33, %42, %51, %18, %60, %69, %72, %81 in 0 : vector<8x256xbf16>, vector<8x256xbf16>, vector<8x256xbf16>, vector<8x256xbf16>, vector<8x256xbf16>, vector<8x256xbf16>, vector<8x256xbf16>, vector<8x256xbf16>, vector<8x256xbf16> -> vector<72x256xbf16>
    %cst_29 = arith.constant dense<0.000000e+00> : vector<4x256xf32>
    %83 = tpu.matmul %19, %82, %cst_29 {dimension_numbers = #tpu.dot_dimension_numbers<[1], [0], [0], [1], [0, 0, 1, 1], [], []>} : vector<4x72xbf16>, vector<72x256xbf16>, vector<4x256xf32> -> vector<4x256xf32>
    %84 = vector.broadcast %20 : vector<4x1xf32> to vector<4x256xf32>
    %85 = arith.mulf %83, %84 : vector<4x256xf32>
    %86 = vector.broadcast %21 : vector<4x1xf32> to vector<4x256xf32>
    %87 = arith.addf %85, %86 : vector<4x256xf32>
    %cst_30 = arith.constant 0.000000e+00 : f32
    %88 = vector.broadcast %cst_30 : f32 to vector<4x256xf32>
    %89 = arith.maximumf %87, %88 : vector<4x256xf32>
    %90 = arith.truncf %89 : vector<4x256xf32> to vector<4x256xbf16>
    %c0_31 = arith.constant 0 : index
    %c0_32 = arith.constant 0 : index
    %c0_33 = arith.constant 0 : index
    %91 = vector.load %arg2[%c0_31, %c0_32, %c0_33] : memref<1x4x256xf32, #tpu.memory_space<vmem>>, vector<1x4x256xf32>
    %92 = vector.shape_cast %91 : vector<1x4x256xf32> to vector<4x256xf32>
    %93 = arith.truncf %92 : vector<4x256xf32> to vector<4x256xbf16>
    %94 = tpu.concatenate %90, %93 in 0 : vector<4x256xbf16>, vector<4x256xbf16> -> vector<8x256xbf16>
    %c0_34 = arith.constant 0 : index
    %c0_35 = arith.constant 0 : index
    %95 = vector.load %arg6[%c0_34, %c0_35] : memref<8x72xbf16, #tpu.memory_space<vmem>>, vector<8x72xbf16>
    %c0_36 = arith.constant 0 : index
    %c0_37 = arith.constant 0 : index
    %96 = vector.load %arg7[%c0_36, %c0_37] : memref<8x1xf32, #tpu.memory_space<vmem>>, vector<8x1xf32>
    %c0_38 = arith.constant 0 : index
    %c0_39 = arith.constant 0 : index
    %97 = vector.load %arg8[%c0_38, %c0_39] : memref<8x1xf32, #tpu.memory_space<vmem>>, vector<8x1xf32>
    %cst_40 = arith.constant 0.000000e+00 : bf16
    %98 = vector.broadcast %cst_40 : bf16 to vector<8x17xbf16>
    %99 = vector.extract_strided_slice %94 {offsets = [0, 0], sizes = [8, 239], strides = [1, 1]} : vector<8x256xbf16> to vector<8x239xbf16>
    %100 = tpu.concatenate %98, %99 in 1 : vector<8x17xbf16>, vector<8x239xbf16> -> vector<8x256xbf16>
    %c1_i32_41 = arith.constant 1 : i32
    %101 = vector.broadcast %c1_i32_41 : i32 to vector<1x256xi32>
    %102 = arith.cmpi sge, %16, %101 : vector<1x256xi32>
    %cst_42 = arith.constant 0.000000e+00 : bf16
    %103 = vector.broadcast %cst_42 : bf16 to vector<8x256xbf16>
    %104 = vector.shape_cast %102 : vector<1x256xi1> to vector<1x256xi1>
    %105 = vector.broadcast %104 : vector<1x256xi1> to vector<8x256xi1>
    %106 = arith.select %105, %100, %103 : vector<8x256xi1>, vector<8x256xbf16>
    %cst_43 = arith.constant 0.000000e+00 : bf16
    %107 = vector.broadcast %cst_43 : bf16 to vector<8x16xbf16>
    %108 = vector.extract_strided_slice %94 {offsets = [0, 0], sizes = [8, 240], strides = [1, 1]} : vector<8x256xbf16> to vector<8x240xbf16>
    %109 = tpu.concatenate %107, %108 in 1 : vector<8x16xbf16>, vector<8x240xbf16> -> vector<8x256xbf16>
    %cst_44 = arith.constant 0.000000e+00 : bf16
    %110 = vector.broadcast %cst_44 : bf16 to vector<8x15xbf16>
    %111 = vector.extract_strided_slice %94 {offsets = [0, 0], sizes = [8, 241], strides = [1, 1]} : vector<8x256xbf16> to vector<8x241xbf16>
    %112 = tpu.concatenate %110, %111 in 1 : vector<8x15xbf16>, vector<8x241xbf16> -> vector<8x256xbf16>
    %c15_i32_45 = arith.constant 15 : i32
    %113 = vector.broadcast %c15_i32_45 : i32 to vector<1x256xi32>
    %114 = arith.cmpi slt, %16, %113 : vector<1x256xi32>
    %cst_46 = arith.constant 0.000000e+00 : bf16
    %115 = vector.broadcast %cst_46 : bf16 to vector<8x256xbf16>
    %116 = vector.shape_cast %114 : vector<1x256xi1> to vector<1x256xi1>
    %117 = vector.broadcast %116 : vector<1x256xi1> to vector<8x256xi1>
    %118 = arith.select %117, %112, %115 : vector<8x256xi1>, vector<8x256xbf16>
    %cst_47 = arith.constant 0.000000e+00 : bf16
    %119 = vector.broadcast %cst_47 : bf16 to vector<8x1xbf16>
    %120 = vector.extract_strided_slice %94 {offsets = [0, 0], sizes = [8, 255], strides = [1, 1]} : vector<8x256xbf16> to vector<8x255xbf16>
    %121 = tpu.concatenate %119, %120 in 1 : vector<8x1xbf16>, vector<8x255xbf16> -> vector<8x256xbf16>
    %c1_i32_48 = arith.constant 1 : i32
    %122 = vector.broadcast %c1_i32_48 : i32 to vector<1x256xi32>
    %123 = arith.cmpi sge, %16, %122 : vector<1x256xi32>
    %cst_49 = arith.constant 0.000000e+00 : bf16
    %124 = vector.broadcast %cst_49 : bf16 to vector<8x256xbf16>
    %125 = vector.shape_cast %123 : vector<1x256xi1> to vector<1x256xi1>
    %126 = vector.broadcast %125 : vector<1x256xi1> to vector<8x256xi1>
    %127 = arith.select %126, %121, %124 : vector<8x256xi1>, vector<8x256xbf16>
    %128 = vector.extract_strided_slice %94 {offsets = [0, 1], sizes = [8, 255], strides = [1, 1]} : vector<8x256xbf16> to vector<8x255xbf16>
    %cst_50 = arith.constant 0.000000e+00 : bf16
    %129 = vector.broadcast %cst_50 : bf16 to vector<8x1xbf16>
    %130 = tpu.concatenate %128, %129 in 1 : vector<8x255xbf16>, vector<8x1xbf16> -> vector<8x256xbf16>
    %c15_i32_51 = arith.constant 15 : i32
    %131 = vector.broadcast %c15_i32_51 : i32 to vector<1x256xi32>
    %132 = arith.cmpi slt, %16, %131 : vector<1x256xi32>
    %cst_52 = arith.constant 0.000000e+00 : bf16
    %133 = vector.broadcast %cst_52 : bf16 to vector<8x256xbf16>
    %134 = vector.shape_cast %132 : vector<1x256xi1> to vector<1x256xi1>
    %135 = vector.broadcast %134 : vector<1x256xi1> to vector<8x256xi1>
    %136 = arith.select %135, %130, %133 : vector<8x256xi1>, vector<8x256xbf16>
    %137 = vector.extract_strided_slice %94 {offsets = [0, 15], sizes = [8, 241], strides = [1, 1]} : vector<8x256xbf16> to vector<8x241xbf16>
    %cst_53 = arith.constant 0.000000e+00 : bf16
    %138 = vector.broadcast %cst_53 : bf16 to vector<8x15xbf16>
    %139 = tpu.concatenate %137, %138 in 1 : vector<8x241xbf16>, vector<8x15xbf16> -> vector<8x256xbf16>
    %c1_i32_54 = arith.constant 1 : i32
    %140 = vector.broadcast %c1_i32_54 : i32 to vector<1x256xi32>
    %141 = arith.cmpi sge, %16, %140 : vector<1x256xi32>
    %cst_55 = arith.constant 0.000000e+00 : bf16
    %142 = vector.broadcast %cst_55 : bf16 to vector<8x256xbf16>
    %143 = vector.shape_cast %141 : vector<1x256xi1> to vector<1x256xi1>
    %144 = vector.broadcast %143 : vector<1x256xi1> to vector<8x256xi1>
    %145 = arith.select %144, %139, %142 : vector<8x256xi1>, vector<8x256xbf16>
    %146 = vector.extract_strided_slice %94 {offsets = [0, 16], sizes = [8, 240], strides = [1, 1]} : vector<8x256xbf16> to vector<8x240xbf16>
    %cst_56 = arith.constant 0.000000e+00 : bf16
    %147 = vector.broadcast %cst_56 : bf16 to vector<8x16xbf16>
    %148 = tpu.concatenate %146, %147 in 1 : vector<8x240xbf16>, vector<8x16xbf16> -> vector<8x256xbf16>
    %149 = vector.extract_strided_slice %94 {offsets = [0, 17], sizes = [8, 239], strides = [1, 1]} : vector<8x256xbf16> to vector<8x239xbf16>
    %cst_57 = arith.constant 0.000000e+00 : bf16
    %150 = vector.broadcast %cst_57 : bf16 to vector<8x17xbf16>
    %151 = tpu.concatenate %149, %150 in 1 : vector<8x239xbf16>, vector<8x17xbf16> -> vector<8x256xbf16>
    %c15_i32_58 = arith.constant 15 : i32
    %152 = vector.broadcast %c15_i32_58 : i32 to vector<1x256xi32>
    %153 = arith.cmpi slt, %16, %152 : vector<1x256xi32>
    %cst_59 = arith.constant 0.000000e+00 : bf16
    %154 = vector.broadcast %cst_59 : bf16 to vector<8x256xbf16>
    %155 = vector.shape_cast %153 : vector<1x256xi1> to vector<1x256xi1>
    %156 = vector.broadcast %155 : vector<1x256xi1> to vector<8x256xi1>
    %157 = arith.select %156, %151, %154 : vector<8x256xi1>, vector<8x256xbf16>
    %158 = tpu.concatenate %106, %109, %118, %127, %94, %136, %145, %148, %157 in 0 : vector<8x256xbf16>, vector<8x256xbf16>, vector<8x256xbf16>, vector<8x256xbf16>, vector<8x256xbf16>, vector<8x256xbf16>, vector<8x256xbf16>, vector<8x256xbf16>, vector<8x256xbf16> -> vector<72x256xbf16>
    %cst_60 = arith.constant dense<0.000000e+00> : vector<8x256xf32>
    %159 = tpu.matmul %95, %158, %cst_60 {dimension_numbers = #tpu.dot_dimension_numbers<[1], [0], [0], [1], [0, 0, 1, 1], [], []>} : vector<8x72xbf16>, vector<72x256xbf16>, vector<8x256xf32> -> vector<8x256xf32>
    %160 = vector.broadcast %96 : vector<8x1xf32> to vector<8x256xf32>
    %161 = arith.mulf %159, %160 : vector<8x256xf32>
    %162 = vector.broadcast %97 : vector<8x1xf32> to vector<8x256xf32>
    %163 = arith.addf %161, %162 : vector<8x256xf32>
    %cst_61 = arith.constant 0.000000e+00 : f32
    %164 = vector.broadcast %cst_61 : f32 to vector<8x256xf32>
    %165 = arith.maximumf %163, %164 : vector<8x256xf32>
    %c0_62 = arith.constant 0 : index
    %c0_63 = arith.constant 0 : index
    %c0_64 = arith.constant 0 : index
    %166 = vector.load %arg9[%c0_62, %c0_63, %c0_64] : memref<1x8x256xf32, #tpu.memory_space<vmem>>, vector<1x8x256xf32>
    %167 = vector.shape_cast %166 : vector<1x8x256xf32> to vector<8x256xf32>
    %168 = vector.shape_cast %165 : vector<8x256xf32> to vector<1x8x256xf32>
    tpu.vector_store %arg9[%c0_62, %c0_63, %c0_64], %168 {strides = array<i32>} : memref<1x8x256xf32, #tpu.memory_space<vmem>>, vector<1x8x256xf32>,
    return
  }
  func.func @transform_0(%arg0: i32) -> (i32, i32, i32) {
    %c0_i32 = arith.constant 0 : i32
    %c0_i32_0 = arith.constant 0 : i32
    %c0_i32_1 = arith.constant 0 : i32
    return %arg0, %c0_i32, %c0_i32_0 : i32, i32, i32
  }
  func.func @transform_1(%arg0: i32) -> (i32, i32, i32) {
    %c0_i32 = arith.constant 0 : i32
    %c0_i32_0 = arith.constant 0 : i32
    %c0_i32_1 = arith.constant 0 : i32
    return %arg0, %c0_i32, %c0_i32_0 : i32, i32, i32
  }
  func.func @transform_2(%arg0: i32) -> (i32, i32) {
    %c0_i32 = arith.constant 0 : i32
    %c0_i32_0 = arith.constant 0 : i32
    %c0_i32_1 = arith.constant 0 : i32
    return %c0_i32, %c0_i32_0 : i32, i32
  }
  func.func @transform_3(%arg0: i32) -> (i32, i32) {
    %c0_i32 = arith.constant 0 : i32
    %c0_i32_0 = arith.constant 0 : i32
    %c0_i32_1 = arith.constant 0 : i32
    return %c0_i32, %c0_i32_0 : i32, i32
  }
  func.func @transform_4(%arg0: i32) -> (i32, i32) {
    %c0_i32 = arith.constant 0 : i32
    %c0_i32_0 = arith.constant 0 : i32
    %c0_i32_1 = arith.constant 0 : i32
    return %c0_i32, %c0_i32_0 : i32, i32
  }
  func.func @transform_5(%arg0: i32) -> (i32, i32) {
    %c0_i32 = arith.constant 0 : i32
    %c0_i32_0 = arith.constant 0 : i32
    %c0_i32_1 = arith.constant 0 : i32
    return %c0_i32, %c0_i32_0 : i32, i32
  }
  func.func @transform_6(%arg0: i32) -> (i32, i32) {
    %c0_i32 = arith.constant 0 : i32
    %c0_i32_0 = arith.constant 0 : i32
    %c0_i32_1 = arith.constant 0 : i32
    return %c0_i32, %c0_i32_0 : i32, i32
  }
  func.func @transform_7(%arg0: i32) -> (i32, i32) {
    %c0_i32 = arith.constant 0 : i32
    %c0_i32_0 = arith.constant 0 : i32
    %c0_i32_1 = arith.constant 0 : i32
    return %c0_i32, %c0_i32_0 : i32, i32
  }
  func.func @transform_8(%arg0: i32) -> (i32, i32, i32) {
    %c0_i32 = arith.constant 0 : i32
    %c0_i32_0 = arith.constant 0 : i32
    %c0_i32_1 = arith.constant 0 : i32
    return %arg0, %c0_i32, %c0_i32_0 : i32, i32, i32
  }
}

</mosaic_0001>

<bundles_post_ra>
// kernel: ternaus_up_forward.1
= control target key start
LH: loop header
LB: loop body
LE: loop exit
PB: predicated region body
PF: predicated region fallthrough
CT: control target
= control target key end

     0   :  { %s1001_s27 = smov 0   ;;  %s1249_s0 = inlined_call_operand.vmem [shape: bf16[2,8,256], index: 0, kind: input, shape index: {}]   ;;  %s1250_s1 = inlined_call_operand.vmem [shape: f32[2,4,256], index: 1, kind: input, shape index: {}]   ;;  %s1251_s2 = inlined_call_operand.vmem [shape: bf16[4,72], index: 2, kind: input, shape index: {}]   ;;  %s1252_s3 = inlined_call_operand.vmem [shape: f32[4,1], index: 3, kind: input, shape index: {}]   ;;  %s1253_s4 = inlined_call_operand.vmem [shape: f32[4,1], index: 4, kind: input, shape index: {}]   ;;  %s1254_s5 = inlined_call_operand.vmem [shape: bf16[8,72], index: 5, kind: input, shape index: {}]   ;;  %s1255_s6 = inlined_call_operand.vmem [shape: f32[8,1], index: 6, kind: input, shape index: {}]   ;;  %s1256_s7 = inlined_call_operand.vmem [shape: f32[8,1], index: 7, kind: input, shape index: {}]   ;;  %s1257_s8 = inlined_call_operand.vmem [shape: f32[2,8,256], index: 8, kind: output, shape index: {}]  }
   0x1 LB: > { %s895_s28 = sadd.s32 4294967295, %s945_s27   ;;  %p899_p0 = scmp.ge.s32.totalorder %s945_s27, 1  ;;  %s945_s27 = sphi %s1001_s27, %s18_s27  }
   0x2   : > { %p272_p1 = scmp.lt.s32.totalorder %s945_s27, 3 }
   0x4   : > { %p273_p2 = pnand %p899_p0, %p272_p1 }
   0x5   : > { %p311_p3 = scmp.lt.s32.totalorder (!%p273_p2), %s895_s28, 1  ;;  %v947_v0 = vmov (!%p273_p2), 0   ;;  %s948_s11 = smov (!%p273_p2), 17   ;;  %v358_v4 = vld [vmem:[%s1252_s3] sm:$0xf] (!%p273_p2)  ;;  %v329_v6 = vlaneseq (!%p273_p2)  ;;  %vm401_vm5 = vcmask (!%p273_p2), 130048  }
   0x6   : > { %276 = sbr.rel (%p273_p2) target bundleno = 760 (0x2f8), region = 52  ;;  %587 = vmatprep.mubr.bf16.mxu0 (!%p273_p2), %v947_v0  ;;  %934 = vset.pattern.permute.xlu0 (!%p273_p2), %v947_v0  ;;  %s949_s12 = smov (!%p273_p2), 16   ;;  %v359_v5 = vld [vmem:[%s1253_s4] sm:$0xf] (!%p273_p2)  ;;  %vm369_vm6 = vcmask (!%p273_p2), 138240   ;;  %vm512_vm10 = vcmask (!%p273_p2), 1043456  }
   0x7   : > { %935 = vset.pattern.permute.xlu1 (!%p273_p2), %v947_v0  ;;  %801 = vmatprep.mubr.bf16.mxu1 (!%p273_p2), %v947_v0  ;;  %s950_s13 = smov (!%p273_p2), 1   ;;  %s951_s14 = smov (!%p273_p2), 15   ;;  %v330_v7 = vand.u32 (!%p273_p2), 127, %v329_v6  ;;  %v386_v11 = vshrl.u32 (!%p273_p2), %v329_v6, 7  ;;  %vm441_vm11 = vcmask (!%p273_p2), 7168   ;;  %vm410_vm12 = vcmask (!%p273_p2), 121856  }
   0x8   : > { %s952_s15 = smov (!%p273_p2), 127   ;;  %s953_s16 = smov (!%p273_p2), 113   ;;  %vm454_vm15 = vcmask (!%p273_p2), 1039360  }
   0x9   : > { %s954_s17 = smov (!%p273_p2), 112   ;;  %s955_s18 = smov (!%p273_p2), 111   ;;  %v331_v8 = vadd.s32 (!%p273_p2), 128, %v330_v7  ;;  %v336_v9 = vand.u32 (!%p273_p2), 15, %v330_v7  ;;  %v387_v12 = vsub.s32 (!%p273_p2), 0, %v386_v11  ;;  %v391_v13 = vsub.s32 (!%p273_p2), 4, %v386_v11 }
   0xb   : > { %v343_v10 = vand.u32 (!%p273_p2), 15, %v331_v8  ;;  %vm377_vm0 = vcmp.ge.s32.totalorder (!%p273_p2), %v336_v9, 1  ;;  %vm1064_vm3 = vcmp.lt.s32.totalorder (!%p273_p2), %v336_v9, 15 }
   0xd   : > { %s1261_s28 = smov (!%p311_p3, %s895_s28), 1  ;;  %vm378_vm1 = vcmp.ge.s32.totalorder %v343_v10, 1  ;;  %vm418_vm4 = vcmp.lt.s32.totalorder %v343_v10, 15 }
   0xe   : > { %s914_s29 = sshll.u32 %s1261_s28, 3  ;;  %vm383_vm2 = vmpackc.low %vm378_vm1, %vm377_vm0  ;;  %vm467_vm0 = vcmask 924672   ;;  %vm480_vm1 = vcmask 916480  }
   0xf   : > { %s315_s10 = scalar_lea.vmem %s1249_s0, %s914_s29  ;;  %v384_v14 = vsel %vm383_vm2, 65537, %v947_v0  ;;  %vm423_vm7 = vmpackc.low %vm418_vm4, %vm1064_vm3  ;;  %vm489_vm2 = vcmask 908288   ;;  %vm545_vm3 = vcmask 588800   ;;  %s320_s30 = scalar_lea.vmem %s1250_s1, %s914_s29  ;;  %vm624_vm4 = vcmask 1041408  }
  0x10   : > { %v356_v1 = vld [vmem:[%s315_s10] sm:$0xff]  ;;  %v1068_v16 = vrot.slane %v384_v14, %v387_v12  ;;  %v1070_v17 = vrot.slane %v384_v14, %v391_v13  ;;  %v424_v24 = vsel %vm423_vm7, 65537, %v947_v0 }
  0x11   : > { %v1021_v2 = vcombine.low %v356_v1, %v356_v1  ;;  %v1027_v3 = vcombine.high %v356_v1, %v356_v1  ;;  %v1085_v31 = vrot.slane %v424_v24, %v387_v12  ;;  %v1087_v32 = vrot.slane %v424_v24, %v391_v13 }
  0x12   : > { %vm393_vm8 = vcmp.ne.s16.totalorder %v1068_v16, 0  ;;  %vm394_vm9 = vcmp.ne.s16.totalorder %v1070_v17, 0 }
  0x13   : > { %365 = vrot.lane.b32.xlu1 %v1021_v2, %s948_s11  ;;  %397 = vrot.lane.b32.xlu0 %v1021_v2, %s949_s12  ;;  %vm433_vm13 = vcmp.ne.s16.totalorder %v1085_v31, 0  ;;  %vm434_vm14 = vcmp.ne.s16.totalorder %v1087_v32, 0 }
  0x17   : > { %367 = vrot.lane.b32.xlu1 %v1027_v3, %s948_s11  ;;  %399 = vrot.lane.b32.xlu0 %v1027_v3, %s949_s12 }
  0x1b   : > { %439 = vrot.lane.b32.xlu1 %v1027_v3, %s950_s13  ;;  %437 = vrot.lane.b32.xlu0 %v1021_v2, %s950_s13 }
  0x1f   : > { %408 = vrot.lane.b32.xlu1 %v1027_v3, %s951_s14  ;;  %406 = vrot.lane.b32.xlu0 %v1021_v2, %s951_s14 }
  0x23   : > { %450 = vrot.lane.b32.xlu1 %v1021_v2, %s952_s15  ;;  %452 = vrot.lane.b32.xlu0 %v1027_v3, %s952_s15 }
  0x27   : > { %465 = vrot.lane.b32.xlu1 %v1027_v3, %s953_s16  ;;  %478 = vrot.lane.b32.xlu0 %v1027_v3, %s954_s17 }
  0x2b   : > { %463 = vrot.lane.b32.xlu1 %v1021_v2, %s953_s16  ;;  %476 = vrot.lane.b32.xlu0 %v1021_v2, %s954_s17 }
  0x2f   : > { %487 = vrot.lane.b32.xlu1 %v1027_v3, %s955_s18  ;;  %485 = vrot.lane.b32.xlu0 %v1021_v2, %s955_s18 }
  0x33   : > { %598 = vperm.xlu0 %934, %v358_v4   ;;  %605 = vperm.xlu1 %935, %v359_v5  }
  0x85   : > { %v366_v18 = vpop.permute.xlu1 %365  ;;  %v398_v19 = vpop.permute.xlu0 %397 }
  0x86   : > { %v405_v20 = vsel %vm401_vm5, 0, %v398_v19  ;;  %v375_v21 = vsel %vm369_vm6, 0, %v366_v18 }
  0x87   : > { %v499_v25 = vrot.slane %v405_v20, 4  ;;  %v395_v30 = vsel %vm393_vm8, %v375_v21, 0  ;;  %v357_v20 = vld [vmem:[%s1251_s2] sm:$0x3] }
  0x88   : > { %v614_v21 = vld [vmem:[%s320_s30] sm:$0xff] }
  0x89   : > { %v368_v22 = vpop.permute.xlu1 %367  ;;  %v400_v23 = vpop.permute.xlu0 %399  ;;  %v515_v38 = vsel %vm512_vm10, %v395_v30, %v499_v25 }
  0x8a   : > { %v370_v26 = vsel %vm369_vm6, %v366_v18, %v368_v22  ;;  %v402_v27 = vsel %vm401_vm5, %v398_v19, %v400_v23  ;;  %v616_v23 = vcombine.high %v614_v21, %v614_v21 }
  0x8b   : > { %v500_v28 = vrot.slane %v402_v27, 4  ;;  %v396_v29 = vsel %vm394_vm9, %v370_v26, 0 }
  0x8c   : > { %v619_v30 = vpack.c.bf16 %v616_v23, %v616_v23 }
  0x8d   : > { %v440_v33 = vpop.permute.xlu1 %439  ;;  %v438_v34 = vpop.permute.xlu0 %437  ;;  %v519_v35 = vsel %vm512_vm10, %v396_v29, %v500_v28  ;;  %v618_v28 = vpack.c.bf16 %v614_v21, %v614_v21 }
  0x8e   : > { %v442_v36 = vsel %vm441_vm11, %v438_v34, %v440_v33  ;;  %v446_v37 = vsel %vm441_vm11, 0, %v438_v34  ;;  %555 = vmatprep.subr.bf16.mxu0 %v519_v35 }
  0x8f   : > { %v448_v39 = vsel %vm393_vm8, %v446_v37, 0  ;;  %v449_v40 = vsel %vm394_vm9, %v442_v36, 0  ;;  %556 = vmatpush1.bf16.msra.mxu0 %v515_v38  ;;  %v622_v37 = vrot.slane %v618_v28, 6 }
  0x90   : > { %v503_v43 = vrot.slane %v448_v39, 4  ;;  %v504_v44 = vrot.slane %v449_v40, 4  ;;  %v623_v39 = vrot.slane %v619_v30, 6 }
  0x91   : > { %v409_v41 = vpop.permute.xlu1 %408  ;;  %v407_v42 = vpop.permute.xlu0 %406 }
  0x92   : > { %v411_v45 = vsel %vm410_vm12, %v407_v42, %v409_v41  ;;  %v415_v46 = vsel %vm410_vm12, 0, %v407_v42 }
  0x93   : > { %v435_v47 = vsel %vm433_vm13, %v415_v46, 0  ;;  %v436_v48 = vsel %vm434_vm14, %v411_v45, 0  ;;  %v632_v45 = vld [vmem:[%s1255_s6] sm:$0xff] }
  0x94   : > { %v527_v49 = vsel %vm512_vm10, %v436_v48, %v504_v44  ;;  %v523_v50 = vsel %vm512_vm10, %v435_v47, %v503_v43  ;;  %v633_v46 = vld [vmem:[%s1256_s7] sm:$0xff] }
  0x95   : > { %v451_v51 = vpop.permute.xlu1 %450  ;;  %557 = vmatprep.subr.bf16.mxu0 %v527_v49  ;;  %v453_v52 = vpop.permute.xlu0 %452 }
  0x96   : > { %v455_v53 = vsel %vm454_vm15, %v451_v51, %v453_v52  ;;  %v459_v54 = vsel %vm454_vm15, %v453_v52, 0  ;;  %558 = vmatpush1.bf16.msra.mxu0 %v523_v50 }
  0x97   : > { %v461_v55 = vsel %vm433_vm13, %v455_v53, 0  ;;  %v462_v56 = vsel %vm434_vm14, %v459_v54, 0 }
  0x98   : > { %v507_v57 = vrot.slane %v461_v55, 4  ;;  %v508_v58 = vrot.slane %v462_v56, 4 }
  0x99   : > { %v466_v59 = vpop.permute.xlu1 %465  ;;  %v479_v60 = vpop.permute.xlu0 %478 }
  0x9a   : > { %v472_v61 = vsel %vm467_vm0, %v466_v59, 0  ;;  %v484_v62 = vsel %vm480_vm1, %v479_v60, 0  ;;  %v535_v63 = vsel %vm512_vm10, %v1027_v3, %v508_v58  ;;  %v531_v0 = vsel %vm512_vm10, %v1021_v2, %v507_v57 }
  0x9b   : > { %v475_v1 = vsel %vm394_vm9, %v472_v61, 0  ;;  %v511_v4 = vrot.slane %v484_v62, 4  ;;  %559 = vmatprep.subr.bf16.mxu0 %v535_v63 }
  0x9c   : > { %560 = vmatpush1.bf16.msra.mxu0 %v531_v0 }
  0x9d   : > { %v464_v5 = vpop.permute.xlu1 %463  ;;  %v477_v6 = vpop.permute.xlu0 %476  ;;  %v543_v7 = vsel %vm512_vm10, %v475_v1, %v511_v4 }
  0x9e   : > { %v468_v8 = vsel %vm467_vm0, %v464_v5, %v466_v59  ;;  %v481_v9 = vsel %vm480_vm1, %v477_v6, %v479_v60  ;;  %561 = vmatprep.subr.bf16.mxu0 %v543_v7 }
  0x9f   : > { %v474_v3 = vsel %vm393_vm8, %v468_v8, 0  ;;  %v510_v10 = vrot.slane %v481_v9, 4 }
  0xa1   : > { %v488_v2 = vpop.permute.xlu1 %487  ;;  %v539_v11 = vsel %vm512_vm10, %v474_v3, %v510_v10  ;;  %v486_v12 = vpop.permute.xlu0 %485 }
  0xa2   : > { %v494_v13 = vsel %vm489_vm2, %v488_v2, 0  ;;  %562 = vmatpush1.bf16.msra.mxu0 %v539_v11  ;;  %v490_v14 = vsel %vm489_vm2, %v486_v12, %v488_v2 }
  0xa3   : > { %v497_v15 = vsel %vm434_vm14, %v494_v13, 0  ;;  %v496_v18 = vsel %vm433_vm13, %v490_v14, 0 }
  0xa4   : > { %908 = vmatprep.subr.msk.bf16.mxu0 %vm512_vm10, %v497_v15  ;;  %v550_v19 = vsel %vm512_vm10, %v496_v18, 0 }
  0xa6   : > { %564 = vmatpush1.bf16.msra.mxu0 %v550_v19 }
  0xa9   : > { %909 = vmatmul.mubr.msk.bf16.vlgmr.msra.gmra.mrb[0].mxu0 %vm545_vm3, %v357_v20 }
  0xb2   : > { %v599_v22 = vpop.permute.xlu0 %598  ;;  %v606_v25 = vpop.permute.xlu1 %605 }
 0x17c   : > { %v589_v24 = vpop.f32.mrb[0].mxu0 }
 0x17d   : > { %v601_v26 = vmul.f32 %v599_v22, %v589_v24  ;;  %v591_v27 = vpop.f32.mrb[1].mxu0 }
 0x17e   : > { %v602_v29 = vmul.f32 %v599_v22, %v591_v27  ;;  %v593_v33 = vpop.f32.mrb[2].mxu0 }
 0x17f   : > { %v608_v34 = vadd.f32 %v606_v25, %v601_v26  ;;  %v594_v35 = vpop.f32.mrb[3].mxu0 }
 0x180   : > { %v609_v36 = vadd.f32 %v606_v25, %v602_v29 }
 0x181   : > { %v610_v38 = vmax.f32 %v608_v34, 0.0 }
 0x182   : > { %v611_v40 = vmax.f32 %v609_v36, 0.0 }
 0x183   : > { %v612_v41 = vpack.c.bf16 %v610_v38, %v610_v38 }
 0x184   : > { %v613_v42 = vpack.c.bf16 %v611_v40, %v611_v40 }
 0x185   : > { %v1144_v43 = vsel %vm624_vm4, %v612_v41, %v622_v37 }
 0x186   : > { %v1146_v44 = vsel %vm624_vm4, %v613_v42, %v623_v39  ;;  %647 = vrot.lane.b32.xlu1 %v1144_v43, %s949_s12 }
 0x187   : > { %649 = vrot.lane.b32.xlu0 %v1146_v44, %s949_s12 }
 0x18a   : > { %636 = vrot.lane.b32.xlu1 %v1144_v43, %s948_s11 }
 0x18b   : > { %638 = vrot.lane.b32.xlu0 %v1146_v44, %s948_s11 }
 0x18e   : > { %665 = vrot.lane.b32.xlu1 %v1144_v43, %s950_s13 }
 0x18f   : > { %667 = vrot.lane.b32.xlu0 %v1146_v44, %s950_s13 }
 0x192   : > { %654 = vrot.lane.b32.xlu1 %v1144_v43, %s951_s14 }
 0x193   : > { %656 = vrot.lane.b32.xlu0 %v1146_v44, %s951_s14  ;;  %s916_s14 = sshll.u32 %s1261_s28, 4 }
 0x196   : > { %678 = vrot.lane.b32.xlu1 %v1146_v44, %s952_s15 }
 0x197   : > { %676 = vrot.lane.b32.xlu0 %v1144_v43, %s952_s15 }
 0x19a   : > { %700 = vrot.lane.b32.xlu1 %v1146_v44, %s954_s17 }
 0x19b   : > { %689 = vrot.lane.b32.xlu0 %v1146_v44, %s953_s16 }
 0x19e   : > { %698 = vrot.lane.b32.xlu1 %v1144_v43, %s954_s17  ;;  %s325_s17 = scalar_lea.vmem %s1257_s8, %s916_s14 }
 0x19f   : > { %687 = vrot.lane.b32.xlu0 %v1144_v43, %s953_s16 }
 0x1a2   : > { %705 = vrot.lane.b32.xlu1 %v1144_v43, %s955_s18 }
 0x1a3   : > { %707 = vrot.lane.b32.xlu0 %v1146_v44, %s955_s18 }
 0x1a6   : > { %812 = vperm.xlu1 %935, %v632_v45  }
 0x1a7   : > { %819 = vperm.xlu0 %934, %v633_v46   ;;  %v631_v46 = vld [vmem:[%s1254_s5] sm:$0xf] }
 0x1f8   : > { %v648_v47 = vpop.permute.xlu1 %647 }
 0x1f9   : > { %v650_v48 = vpop.permute.xlu0 %649  ;;  %v653_v50 = vsel %vm401_vm5, 0, %v648_v47 }
 0x1fa   : > { %v651_v49 = vsel %vm401_vm5, %v648_v47, %v650_v48  ;;  %v717_v57 = vrot.slane %v653_v50, 4 }
 0x1fb   : > { %v718_v54 = vrot.slane %v651_v49, 4 }
 0x1fc   : > { %v637_v51 = vpop.permute.xlu1 %636 }
 0x1fd   : > { %v643_v52 = vsel %vm369_vm6, 0, %v637_v51  ;;  %v639_v53 = vpop.permute.xlu0 %638 }
 0x1fe   : > { %v640_v55 = vsel %vm369_vm6, %v637_v51, %v639_v53  ;;  %v645_v56 = vsel %vm393_vm8, %v643_v52, 0 }
 0x1ff   : > { %v646_v58 = vsel %vm394_vm9, %v640_v55, 0  ;;  %v732_v63 = vsel %vm512_vm10, %v645_v56, %v717_v57 }
 0x200   : > { %v666_v59 = vpop.permute.xlu1 %665  ;;  %v736_v60 = vsel %vm512_vm10, %v646_v58, %v718_v54 }
 0x201   : > { %v672_v61 = vsel %vm441_vm11, 0, %v666_v59  ;;  %v668_v62 = vpop.permute.xlu0 %667  ;;  %769 = vmatprep.subr.bf16.mxu1 %v736_v60 }
 0x202   : > { %v669_v0 = vsel %vm441_vm11, %v666_v59, %v668_v62  ;;  %770 = vmatpush1.bf16.msra.mxu1 %v732_v63  ;;  %v674_v4 = vsel %vm393_vm8, %v672_v61, 0 }
 0x203   : > { %v675_v1 = vsel %vm394_vm9, %v669_v0, 0  ;;  %v721_v10 = vrot.slane %v674_v4, 4 }
 0x204   : > { %v655_v5 = vpop.permute.xlu1 %654  ;;  %v722_v8 = vrot.slane %v675_v1, 4 }
 0x205   : > { %v661_v6 = vsel %vm410_vm12, 0, %v655_v5  ;;  %v657_v7 = vpop.permute.xlu0 %656 }
 0x206   : > { %v663_v9 = vsel %vm433_vm13, %v661_v6, 0  ;;  %v658_v3 = vsel %vm410_vm12, %v655_v5, %v657_v7 }
 0x207   : > { %v664_v2 = vsel %vm434_vm14, %v658_v3, 0  ;;  %v740_v15 = vsel %vm512_vm10, %v663_v9, %v721_v10 }
 0x208   : > { %v679_v11 = vpop.permute.xlu1 %678  ;;  %v744_v12 = vsel %vm512_vm10, %v664_v2, %v722_v8 }
 0x209   : > { %v683_v13 = vsel %vm454_vm15, %v679_v11, 0  ;;  %v677_v14 = vpop.permute.xlu0 %676  ;;  %771 = vmatprep.subr.bf16.mxu1 %v744_v12 }
 0x20a   : > { %v686_v18 = vsel %vm434_vm14, %v683_v13, 0  ;;  %v680_v19 = vsel %vm454_vm15, %v677_v14, %v679_v11  ;;  %772 = vmatpush1.bf16.msra.mxu1 %v740_v15 }
 0x20b   : > { %v726_v20 = vrot.slane %v686_v18, 4  ;;  %v685_v21 = vsel %vm433_vm13, %v680_v19, 0 }
 0x20c   : > { %v725_v22 = vrot.slane %v685_v21, 4  ;;  %v701_v23 = vpop.permute.xlu1 %700 }
 0x20d   : > { %v704_v24 = vsel %vm480_vm1, %v701_v23, 0  ;;  %v690_v25 = vpop.permute.xlu0 %689  ;;  %v750_v26 = vsel %vm512_vm10, %v1146_v44, %v726_v20 }
 0x20e   : > { %v729_v27 = vrot.slane %v704_v24, 4  ;;  %v694_v28 = vsel %vm467_vm0, %v690_v25, 0  ;;  %773 = vmatprep.subr.bf16.mxu1 %v750_v26  ;;  %v747_v29 = vsel %vm512_vm10, %v1144_v43, %v725_v22 }
 0x20f   : > { %v697_v30 = vsel %vm394_vm9, %v694_v28, 0  ;;  %774 = vmatpush1.bf16.msra.mxu1 %v747_v29 }
 0x210   : > { %v699_v33 = vpop.permute.xlu1 %698  ;;  %v758_v34 = vsel %vm512_vm10, %v697_v30, %v729_v27 }
 0x211   : > { %v702_v35 = vsel %vm480_vm1, %v699_v33, %v701_v23  ;;  %v688_v36 = vpop.permute.xlu0 %687  ;;  %775 = vmatprep.subr.bf16.mxu1 %v758_v34 }
 0x212   : > { %v728_v37 = vrot.slane %v702_v35, 4  ;;  %v691_v38 = vsel %vm467_vm0, %v688_v36, %v690_v25 }
 0x213   : > { %v696_v39 = vsel %vm393_vm8, %v691_v38, 0 }
 0x214   : > { %v706_v40 = vpop.permute.xlu1 %705  ;;  %v754_v41 = vsel %vm512_vm10, %v696_v39, %v728_v37 }
 0x215   : > { %v708_v17 = vpop.permute.xlu0 %707  ;;  %776 = vmatpush1.bf16.msra.mxu1 %v754_v41 }
 0x216   : > { %v709_v42 = vsel %vm489_vm2, %v706_v40, %v708_v17  ;;  %v712_v43 = vsel %vm489_vm2, %v708_v17, 0 }
 0x217   : > { %v715_v44 = vsel %vm434_vm14, %v712_v43, 0  ;;  %v714_v45 = vsel %vm433_vm13, %v709_v42, 0 }
 0x218   : > { %910 = vmatprep.subr.msk.bf16.mxu1 %vm512_vm10, %v715_v44  ;;  %v764_v16 = vsel %vm512_vm10, %v714_v45, 0 }
 0x219   : > { %778 = vmatpush1.bf16.msra.mxu1 %v764_v16 }
 0x21c   : > { %911 = vmatmul.mubr.msk.bf16.vlgmr.msra.gmra.mrb[0].mxu1 %vm545_vm3, %v631_v46 }
 0x225   : > { %v813_v47 = vpop.permute.xlu1 %812 }
 0x226   : > { %v820_v50 = vpop.permute.xlu0 %819 }
 0x2ef   : > { %v803_v48 = vpop.f32.mrb[0].mxu1 }
 0x2f0   : > { %v815_v49 = vmul.f32 %v813_v47, %v803_v48  ;;  %v805_v32 = vpop.f32.mrb[1].mxu1 }
 0x2f1   : > { %v816_v51 = vmul.f32 %v813_v47, %v805_v32  ;;  %v807_v31 = vpop.f32.mrb[2].mxu1 }
 0x2f2   : > { %v822_v52 = vadd.f32 %v820_v50, %v815_v49  ;;  %v808_v53 = vpop.f32.mrb[3].mxu1 }
 0x2f3   : > { %v823_v54 = vadd.f32 %v820_v50, %v816_v51 }
 0x2f4   : > { %v824_v55 = vmax.f32 %v822_v52, 0.0 }
 0x2f5   : > { %v825_v56 = vmax.f32 %v823_v54, 0.0 }
 0x2f6   : > { %826 = vst [vmem:[%s325_s17] sm:$0xff] %v824_v55 }
 0x2f7   : > { %827 = vst [vmem:[%s325_s17 + $0x8] sm:$0xff] %v825_v56 }
 0x2f8 PF: > { %s18_s27 = sadd.s32 1, %s945_s27  }
 0x2f9   : > { %p15_p4 = scmp.ge.s32.totalorder %s18_s27, 4  }
 0x2fb   :  { %17 = sbr.rel (!%p15_p4) target bundleno = 1 (0x1), region = 85 }

</bundles_post_ra>
